<compile_context>
chip_gen: v5e
topology: v5e:2x2
jax: 0.10.0
libtpu: 0.0.40
codegen_flags: <defaults>
</compile_context>

<pallas_src>
import jax
import jax.numpy as jnp
from jax.experimental import pallas as pl
from jax.experimental.pallas import tpu as pltpu


_TB_CAP = 1024        # max batch-tile rows (multiple of 8)
_SINGLE_TILE_MAX = 512  # below this, one tile; per-step overhead dominates


def _round_up(a, m):
    return (a + m - 1) // m * m


def _choose_batch_tiling(B):
    """Return (TB, B_pad): batch tile (multiple of 8) and padded batch.

    Small batches -> one tile.  Large batches -> >= 2 grid steps (v7x
    megacore) with padding bounded by ~8 rows per step (<1% waste).
    """
    B8 = _round_up(B, 8)
    if B8 <= _SINGLE_TILE_MAX:
        return B8, B8
    n_steps = max(2, pl.cdiv(B8, _TB_CAP))
    TB = _round_up(pl.cdiv(B8, n_steps), 8)
    return TB, TB * n_steps


def cnn_t2_head_kernel(x_ref, w1_ref, b1_ref, w2_ref, b2_ref, o_ref):
    # Layer 1: Linear(512 -> 256[=224 zero-padded]) + ReLU.
    # bf16 MXU operands, f32 accumulation; bias/ReLU in f32, lane-dense.
    h = jnp.dot(x_ref[...], w1_ref[...], preferred_element_type=jnp.float32)
    h = jnp.maximum(h + b1_ref[...], 0.0)
    # Layer 2: Linear(256 -> 2); the zero-padded rows of w2 contribute nothing.
    y = jnp.dot(h.astype(jnp.bfloat16), w2_ref[...],
                preferred_element_type=jnp.float32) + b2_ref[...]
    # Softmax over 2 classes == sigmoid of the logit difference:
    #   p1 = exp(y1) / (exp(y0) + exp(y1)) = 1 / (1 + exp(y0 - y1))
    # Avoids the two cross-lane reduces + divide of a generic softmax; exp
    # lands on the EUP.  Clamp keeps exp() finite (sigmoid saturates anyway).
    d = jnp.clip(y[:, 0:1] - y[:, 1:2], -30.0, 30.0)
    p1 = pl.reciprocal(1.0 + jnp.exp(d), approx=True)
    p0 = 1.0 - p1
    o_ref[:, 0:1] = p0.astype(o_ref.dtype)
    o_ref[:, 1:2] = p1.astype(o_ref.dtype)


def prepare_head_params(w1, b1, w2, b2):
    """One-time parameter prep (do NOT call per forward pass).

    * Zero-pads the hidden dim 224 -> 256: extra w1 columns / b1 entries are
      zero (ReLU(0) = 0) and the extra w2 ROWS are zero (contribute nothing
      to the logits), so results are unchanged.
    * Casts matmul weights to bf16 (MXU operands); biases stay f32.
    """
    din, h = w1.shape
    hp = _round_up(h, 128)
    if hp != h:
        w1 = jnp.pad(w1, ((0, 0), (0, hp - h)))
        b1 = jnp.pad(b1, ((0, 0), (0, hp - h)))
        w2 = jnp.pad(w2, ((0, hp - h), (0, 0)))
    return (w1.astype(jnp.bfloat16), b1.astype(jnp.float32),
            w2.astype(jnp.bfloat16), b2.astype(jnp.float32))


def cnn_t2_head_forward(x, params):
    """x: [B, 512] features (ideally bf16). Returns softmax probs [B, 2] f32."""
    w1, b1, w2, b2 = params
    B, Din = x.shape
    Hp = w1.shape[1]
    Dout = w2.shape[1]
    assert w1.shape[0] == Din and w2.shape[0] == Hp
    assert b1.shape == (1, Hp) and b2.shape == (1, Dout)

    if x.dtype != jnp.bfloat16:
        # Fallback only: the producer (backbone) should emit bf16 features so
        # the dominant HBM stream is halved without an extra XLA cast pass.
        x = x.astype(jnp.bfloat16)

    TB, B_pad = _choose_batch_tiling(B)
    if B_pad != B:
        x = jnp.pad(x, ((0, B_pad - B), (0, 0)))
    grid = (B_pad // TB,)

    cost = pl.CostEstimate(
        flops=2 * B_pad * (Din * Hp + Hp * Dout),
        transcendentals=B_pad,  # one exp per row (2-class softmax)
        bytes_accessed=(x.size * x.dtype.itemsize
                        + w1.size * 2 + w2.size * 2
                        + b1.size * 4 + b2.size * 4
                        + B_pad * Dout * 4),
    )

    out = pl.pallas_call(
        cnn_t2_head_kernel,
        out_shape=jax.ShapeDtypeStruct((B_pad, Dout), jnp.float32),
        grid_spec=pl.GridSpec(
            grid=grid,
            in_specs=[
                pl.BlockSpec((TB, Din), lambda i: (i, 0)),   # x: tiled over batch
                pl.BlockSpec((Din, Hp), lambda i: (0, 0)),   # w1: VMEM-resident
                pl.BlockSpec((1, Hp), lambda i: (0, 0)),     # b1: resident
                pl.BlockSpec((Hp, Dout), lambda i: (0, 0)),  # w2: resident
                pl.BlockSpec((1, Dout), lambda i: (0, 0)),   # b2: resident
            ],
            # (TB, 2) output -> masked narrow stores, but the write traffic is
            # negligible; padding it to 128 lanes would add ~TB*512 B/step of
            # HBM writes, a net loss for this mem-bound kernel (per review).
            out_specs=pl.BlockSpec((TB, Dout), lambda i: (i, 0)),
        ),
        compiler_params=pltpu.CompilerParams(
            dimension_semantics=("parallel",),
        ),
        cost_estimate=cost,
    )(x, w1, b1, w2, b2)

    # Padded rows are meaningless 0.5/0.5 softmax rows; slice them off.
    return out[:B]


def init_params(key):
    """Deterministic params mirroring the CNN_T2 head's nn.Linear shapes.

    PyTorch stores weight as [out, in]; we store the transpose [in, out] so
    the kernel computes x @ W without an in-kernel transpose.
    """
    k1, k2, k3, k4 = jax.random.split(key, 4)
    din, dh, dout = 512, 224, 2   # resnet34 fc.in_features = 512
    lim1 = 1.0 / jnp.sqrt(float(din))
    lim2 = 1.0 / jnp.sqrt(float(dh))
    w1 = jax.random.uniform(k1, (din, dh), jnp.float32, -lim1, lim1)
    b1 = jax.random.uniform(k2, (1, dh), jnp.float32, -lim1, lim1)
    w2 = jax.random.uniform(k3, (dh, dout), jnp.float32, -lim2, lim2)
    b2 = jax.random.uniform(k4, (1, dout), jnp.float32, -lim2, lim2)
    return w1, b1, w2, b2


def reference_forward_f32(x, w1, b1, w2, b2):
    """Pure-JAX f32 reference of the true PyTorch numerics."""
    h = jnp.maximum(jnp.dot(x.astype(jnp.float32), w1) + b1, 0.0)
    y = jnp.dot(h, w2) + b2
    return jax.nn.softmax(y, axis=-1)


def reference_forward_bf16(x, w1, b1, w2, b2):
    """Pure-JAX reference using the same bf16 MXU-operand / f32-accum path."""
    h = jnp.dot(x.astype(jnp.bfloat16), w1.astype(jnp.bfloat16),
                preferred_element_type=jnp.float32) + b1
    h = jnp.maximum(h, 0.0)
    y = jnp.dot(h.astype(jnp.bfloat16), w2.astype(jnp.bfloat16),
                preferred_element_type=jnp.float32) + b2
    return jax.nn.softmax(y, axis=-1)


if __name__ == "__main__":
    key = jax.random.PRNGKey(0)
    kx, kp = jax.random.split(key)

    batch = 8
    # Backbone features assumed emitted in bf16 (see perf note above).
    x = jax.random.normal(kx, (batch, 512), dtype=jnp.float32).astype(jnp.bfloat16)
    w1, b1, w2, b2 = init_params(kp)
    params = prepare_head_params(w1, b1, w2, b2)

    out = cnn_t2_head_forward(x, params)
    out = jax.block_until_ready(out)
    assert out.shape == (batch, 2)

    # Tight check against the identical bf16-operand path.
    ref_bf16 = reference_forward_bf16(x, w1, b1, w2, b2)
    assert jnp.allclose(out, ref_bf16, atol=2e-3, rtol=2e-3)
    # Looser check against true f32 PyTorch-style numerics (bf16 operand cast
    # is the intentional accuracy trade-off).
    ref_f32 = reference_forward_f32(x, w1, b1, w2, b2)
    assert jnp.allclose(out, ref_f32, atol=2e-2, rtol=2e-2)
    # Softmax rows sum to 1.
    assert jnp.allclose(jnp.sum(out, axis=-1), jnp.ones((batch,)), atol=1e-3)

    print("KERNEL_OK")
</pallas_src>

<mosaic_0001>
module attributes {stable_mosaic.version = 11 : i64} {
  func.func @cnn_t2_head_kernel(%arg0: i32, %arg1: memref<8x512xbf16, #tpu.memory_space<vmem>>, %arg2: memref<512x256xbf16, #tpu.memory_space<vmem>>, %arg3: memref<1x256xf32, #tpu.memory_space<vmem>>, %arg4: memref<256x2xbf16, #tpu.memory_space<vmem>>, %arg5: memref<1x2xf32, #tpu.memory_space<vmem>>, %arg6: memref<8x2xf32, #tpu.memory_space<vmem>>) attributes {dimension_semantics = [#tpu.dimension_semantics<parallel>], iteration_bounds = array<i64: 1>, scalar_prefetch = 0 : i64, scratch_operands = 0 : i64, tpu.core_type = #tpu.core_type<tc>, window_params = [{transform_indices = @transform_0, window_bounds = array<i64: 8, 512>}, {pipeline_mode = #tpu.pipeline_mode<synchronous>, transform_indices = @transform_1, window_bounds = array<i64: 512, 256>}, {pipeline_mode = #tpu.pipeline_mode<synchronous>, transform_indices = @transform_2, window_bounds = array<i64: 1, 256>}, {pipeline_mode = #tpu.pipeline_mode<synchronous>, transform_indices = @transform_3, window_bounds = array<i64: 256, 2>}, {pipeline_mode = #tpu.pipeline_mode<synchronous>, transform_indices = @transform_4, window_bounds = array<i64: 1, 2>}, {transform_indices = @transform_5, window_bounds = array<i64: 8, 2>}]} {
    %c0 = arith.constant 0 : index
    %c0_0 = arith.constant 0 : index
    %0 = vector.load %arg1[%c0, %c0_0] : memref<8x512xbf16, #tpu.memory_space<vmem>>, vector<8x512xbf16>
    %c0_1 = arith.constant 0 : index
    %c0_2 = arith.constant 0 : index
    %1 = vector.load %arg2[%c0_1, %c0_2] : memref<512x256xbf16, #tpu.memory_space<vmem>>, vector<512x256xbf16>
    %cst = arith.constant dense<0.000000e+00> : vector<8x256xf32>
    %2 = tpu.matmul %0, %1, %cst {dimension_numbers = #tpu.dot_dimension_numbers<[1], [0], [0], [1], [0, 0, 1, 1], [], []>} : vector<8x512xbf16>, vector<512x256xbf16>, vector<8x256xf32> -> vector<8x256xf32>
    %c0_3 = arith.constant 0 : index
    %c0_4 = arith.constant 0 : index
    %3 = vector.load %arg3[%c0_3, %c0_4] : memref<1x256xf32, #tpu.memory_space<vmem>>, vector<1x256xf32>
    %4 = vector.broadcast %3 : vector<1x256xf32> to vector<8x256xf32>
    %5 = arith.addf %2, %4 : vector<8x256xf32>
    %cst_5 = arith.constant 0.000000e+00 : f32
    %6 = vector.broadcast %cst_5 : f32 to vector<8x256xf32>
    %7 = arith.maximumf %5, %6 : vector<8x256xf32>
    %8 = arith.truncf %7 : vector<8x256xf32> to vector<8x256xbf16>
    %c0_6 = arith.constant 0 : index
    %c0_7 = arith.constant 0 : index
    %9 = vector.load %arg4[%c0_6, %c0_7] : memref<256x2xbf16, #tpu.memory_space<vmem>>, vector<256x2xbf16>
    %cst_8 = arith.constant dense<0.000000e+00> : vector<8x2xf32>
    %10 = tpu.matmul %8, %9, %cst_8 {dimension_numbers = #tpu.dot_dimension_numbers<[1], [0], [0], [1], [0, 0, 1, 1], [], []>} : vector<8x256xbf16>, vector<256x2xbf16>, vector<8x2xf32> -> vector<8x2xf32>
    %c0_9 = arith.constant 0 : index
    %c0_10 = arith.constant 0 : index
    %11 = vector.load %arg5[%c0_9, %c0_10] : memref<1x2xf32, #tpu.memory_space<vmem>>, vector<1x2xf32>
    %12 = vector.broadcast %11 : vector<1x2xf32> to vector<8x2xf32>
    %13 = arith.addf %10, %12 : vector<8x2xf32>
    %14 = vector.extract_strided_slice %13 {offsets = [0, 0], sizes = [8, 1], strides = [1, 1]} : vector<8x2xf32> to vector<8x1xf32>
    %15 = vector.extract_strided_slice %13 {offsets = [0, 1], sizes = [8, 1], strides = [1, 1]} : vector<8x2xf32> to vector<8x1xf32>
    %16 = arith.subf %14, %15 : vector<8x1xf32>
    %cst_11 = arith.constant -3.000000e+01 : f32
    %cst_12 = arith.constant 3.000000e+01 : f32
    %17 = vector.broadcast %cst_11 : f32 to vector<8x1xf32>
    %18 = arith.maximumf %17, %16 : vector<8x1xf32>
    %19 = vector.broadcast %cst_12 : f32 to vector<8x1xf32>
    %20 = arith.minimumf %19, %18 : vector<8x1xf32>
    %21 = math.exp %20 : vector<8x1xf32>
    %cst_13 = arith.constant 1.000000e+00 : f32
    %22 = vector.broadcast %cst_13 : f32 to vector<8x1xf32>
    %23 = arith.addf %22, %21 : vector<8x1xf32>
    %24 = tpu.reciprocal %23 {approx = true} : vector<8x1xf32> -> vector<8x1xf32>
    %cst_14 = arith.constant 1.000000e+00 : f32
    %25 = vector.broadcast %cst_14 : f32 to vector<8x1xf32>
    %26 = arith.subf %25, %24 : vector<8x1xf32>
    %c0_15 = arith.constant 0 : index
    %c0_16 = arith.constant 0 : index
    %27 = vector.load %arg6[%c0_15, %c0_16] : memref<8x2xf32, #tpu.memory_space<vmem>>, vector<8x1xf32>
    tpu.vector_store %arg6[%c0_15, %c0_16], %26 {strides = array<i32>} : memref<8x2xf32, #tpu.memory_space<vmem>>, vector<8x1xf32>,
    %c0_17 = arith.constant 0 : index
    %c1 = arith.constant 1 : index
    %28 = vector.load %arg6[%c0_17, %c1] : memref<8x2xf32, #tpu.memory_space<vmem>>, vector<8x1xf32>
    tpu.vector_store %arg6[%c0_17, %c1], %24 {strides = array<i32>} : memref<8x2xf32, #tpu.memory_space<vmem>>, vector<8x1xf32>,
    return
  }
  func.func @transform_0(%arg0: i32) -> (i32, i32) {
    %c0_i32 = arith.constant 0 : i32
    %c0_i32_0 = arith.constant 0 : i32
    return %arg0, %c0_i32 : i32, i32
  }
  func.func @transform_1(%arg0: i32) -> (i32, i32) {
    %c0_i32 = arith.constant 0 : i32
    %c0_i32_0 = arith.constant 0 : i32
    %c0_i32_1 = arith.constant 0 : i32
    return %c0_i32, %c0_i32_0 : i32, i32
  }
  func.func @transform_2(%arg0: i32) -> (i32, i32) {
    %c0_i32 = arith.constant 0 : i32
    %c0_i32_0 = arith.constant 0 : i32
    %c0_i32_1 = arith.constant 0 : i32
    return %c0_i32, %c0_i32_0 : i32, i32
  }
  func.func @transform_3(%arg0: i32) -> (i32, i32) {
    %c0_i32 = arith.constant 0 : i32
    %c0_i32_0 = arith.constant 0 : i32
    %c0_i32_1 = arith.constant 0 : i32
    return %c0_i32, %c0_i32_0 : i32, i32
  }
  func.func @transform_4(%arg0: i32) -> (i32, i32) {
    %c0_i32 = arith.constant 0 : i32
    %c0_i32_0 = arith.constant 0 : i32
    %c0_i32_1 = arith.constant 0 : i32
    return %c0_i32, %c0_i32_0 : i32, i32
  }
  func.func @transform_5(%arg0: i32) -> (i32, i32) {
    %c0_i32 = arith.constant 0 : i32
    %c0_i32_0 = arith.constant 0 : i32
    return %arg0, %c0_i32 : i32, i32
  }
}

</mosaic_0001>

<bundles_post_ra>
// kernel: tpu_custom_call.1
= control target key start
LH: loop header
LB: loop body
LE: loop exit
PB: predicated region body
PF: predicated region fallthrough
CT: control target
= control target key end

     0   :  { %10 = vsyncpa [#allocation3], 0  ;;  %s1170_s21 = smov [#allocation2]   ;;  %s1171_s23 = smov 128   ;;  %s1290_s0 = inlined_call_operand.vmem [shape: bf16[8,512], index: 0, kind: input, shape index: {}]   ;;  %s1291_s1 = inlined_call_operand.hbm [shape: bf16[512,256], index: 1, kind: input, shape index: {}]   ;;  %s1292_s2 = inlined_call_operand.vmem [shape: f32[1,256], index: 2, kind: input, shape index: {}]   ;;  %s1293_s3 = inlined_call_operand.vmem [shape: bf16[256,2], index: 3, kind: input, shape index: {}]   ;;  %s1294_s4 = inlined_call_operand.vmem [shape: f32[1,2], index: 4, kind: input, shape index: {}]   ;;  %s1295_s5 = inlined_call_operand.vmem [shape: f32[8,2], index: 5, kind: output, shape index: {}]  }
   0x1   :  { %s17_s20 = sshll.u32 %s1291_s1, 4  ;;  %s19_s22 = sshll.u32 %s1170_s21, 4  ;;  %s18_s20 = int_to_ptr.hbm [resolvable:$true] %s17_s20  ;;  %s20_s22 = int_to_ptr.vmem [resolvable:$true] %s19_s22 }
   0x2   :  { %s1172_s24 = smov 8  }
   0x3   :  { %25 = dma.hbm_to_vmem [thread:$0]  %s18_s20, 8192, %s20_s22, [#allocation3], %s1171_s23, %s1171_s23, %s1172_s24  }
   0x4   :  { %1168 = dma.done.wait [#allocation3], 8192  }
   0x5   :  { %1169 = vsyncadd [#allocation3], 4294959104  ;;  %v791_v0 = vld [vmem:[#allocation2 + $0x70] sm:$0xf]  ;;  %v1069_v1 = vld [vmem:[#allocation2 + $0x74] sm:$0xf0] }
   0x6   :  { %v855_v2 = vld [vmem:[#allocation2 + $0xf0] sm:$0xf]  ;;  %v792_v3 = vor.u32 %v1069_v1, %v791_v0  ;;  %v1085_v4 = vld [vmem:[#allocation2 + $0xf4] sm:$0xf0]  ;;  %v783_v11 = vld [vmem:[#allocation2 + $0x60] sm:$0xf] }
   0x7   :  { %v919_v5 = vld [vmem:[#allocation2 + $0x170] sm:$0xf]  ;;  %v1101_v6 = vld [vmem:[#allocation2 + $0x174] sm:$0xf0]  ;;  %v856_v7 = vor.u32 %v1085_v4, %v855_v2  ;;  %v1067_v13 = vld [vmem:[#allocation2 + $0x64] sm:$0xf0] }
   0x8   :  { %v920_v8 = vor.u32 %v1101_v6, %v919_v5  ;;  %v983_v9 = vld [vmem:[#allocation2 + $0x1f0] sm:$0xf]  ;;  %v1117_v10 = vld [vmem:[#allocation2 + $0x1f4] sm:$0xf0]  ;;  %442 = vmatpush.bf16.msra.mxu0 %v792_v3  ;;  %v847_v14 = vld [vmem:[#allocation2 + $0xe0] sm:$0xf]  ;;  %v784_v16 = vor.u32 %v1067_v13, %v783_v11 }
   0x9   :  { %v984_v12 = vor.u32 %v1117_v10, %v983_v9  ;;  %v1083_v15 = vld [vmem:[#allocation2 + $0xe4] sm:$0xf0]  ;;  %455 = vmatpush.bf16.msra.mxu1 %v856_v7  ;;  %v911_v18 = vld [vmem:[#allocation2 + $0x160] sm:$0xf]  ;;  %v775_v23 = vld [vmem:[#allocation2 + $0x50] sm:$0xf] }
   0xa   :  { %468 = vmatpush.bf16.msra.mxu2 %v920_v8  ;;  %v848_v17 = vor.u32 %v1083_v15, %v847_v14  ;;  %v1099_v19 = vld [vmem:[#allocation2 + $0x164] sm:$0xf0]  ;;  %v975_v20 = vld [vmem:[#allocation2 + $0x1e0] sm:$0xf]  ;;  %v1065_v24 = vld [vmem:[#allocation2 + $0x54] sm:$0xf0] }
   0xb   :  { %481 = vmatpush.bf16.msra.mxu3 %v984_v12  ;;  %v912_v21 = vor.u32 %v1099_v19, %v911_v18  ;;  %v1115_v22 = vld [vmem:[#allocation2 + $0x1e4] sm:$0xf0]  ;;  %v839_v26 = vld [vmem:[#allocation2 + $0xd0] sm:$0xf]  ;;  %v1081_v27 = vld [vmem:[#allocation2 + $0xd4] sm:$0xf0]  ;;  %v776_v29 = vor.u32 %v1065_v24, %v775_v23 }
   0xc   :  { %v976_v25 = vor.u32 %v1115_v22, %v975_v20  ;;  %v903_v28 = vld [vmem:[#allocation2 + $0x150] sm:$0xf]  ;;  %443 = vmatpush.bf16.msra.mxu0 %v784_v16  ;;  %v1097_v30 = vld [vmem:[#allocation2 + $0x154] sm:$0xf0]  ;;  %v840_v33 = vor.u32 %v1081_v27, %v839_v26  ;;  %v767_v35 = vld [vmem:[#allocation2 + $0x40] sm:$0xf] }
   0xd   :  { %v967_v31 = vld [vmem:[#allocation2 + $0x1d0] sm:$0xf]  ;;  %v1113_v32 = vld [vmem:[#allocation2 + $0x1d4] sm:$0xf0]  ;;  %456 = vmatpush.bf16.msra.mxu1 %v848_v17  ;;  %v904_v34 = vor.u32 %v1097_v30, %v903_v28  ;;  %v1063_v36 = vld [vmem:[#allocation2 + $0x44] sm:$0xf0] }
   0xe   :  { %469 = vmatpush.bf16.msra.mxu2 %v912_v21  ;;  %v831_v37 = vld [vmem:[#allocation2 + $0xc0] sm:$0xf]  ;;  %v968_v38 = vor.u32 %v1113_v32, %v967_v31  ;;  %v1079_v39 = vld [vmem:[#allocation2 + $0xc4] sm:$0xf0]  ;;  %v768_v44 = vor.u32 %v1063_v36, %v767_v35  ;;  %v759_v47 = vld [vmem:[#allocation2 + $0x30] sm:$0xf] }
   0xf   :  { %482 = vmatpush.bf16.msra.mxu3 %v976_v25  ;;  %v895_v40 = vld [vmem:[#allocation2 + $0x140] sm:$0xf]  ;;  %v1095_v41 = vld [vmem:[#allocation2 + $0x144] sm:$0xf0]  ;;  %v832_v45 = vor.u32 %v1079_v39, %v831_v37  ;;  %v1061_v48 = vld [vmem:[#allocation2 + $0x34] sm:$0xf0] }
  0x10   :  { %v959_v42 = vld [vmem:[#allocation2 + $0x1c0] sm:$0xf]  ;;  %v1111_v43 = vld [vmem:[#allocation2 + $0x1c4] sm:$0xf0]  ;;  %444 = vmatpush.bf16.msra.mxu0 %v776_v29  ;;  %v896_v46 = vor.u32 %v1095_v41, %v895_v40  ;;  %v823_v49 = vld [vmem:[#allocation2 + $0xb0] sm:$0xf]  ;;  %v760_v56 = vor.u32 %v1061_v48, %v759_v47 }
  0x11   :  { %457 = vmatpush.bf16.msra.mxu1 %v840_v33  ;;  %v960_v50 = vor.u32 %v1111_v43, %v959_v42  ;;  %v1077_v51 = vld [vmem:[#allocation2 + $0xb4] sm:$0xf0]  ;;  %v887_v52 = vld [vmem:[#allocation2 + $0x130] sm:$0xf]  ;;  %v751_v59 = vld [vmem:[#allocation2 + $0x20] sm:$0xf] }
  0x12   :  { %470 = vmatpush.bf16.msra.mxu2 %v904_v34  ;;  %v1093_v53 = vld [vmem:[#allocation2 + $0x134] sm:$0xf0]  ;;  %v951_v54 = vld [vmem:[#allocation2 + $0x1b0] sm:$0xf]  ;;  %v824_v57 = vor.u32 %v1077_v51, %v823_v49  ;;  %v1059_v60 = vld [vmem:[#allocation2 + $0x24] sm:$0xf0] }
  0x13   :  { %483 = vmatpush.bf16.msra.mxu3 %v968_v38  ;;  %v1109_v55 = vld [vmem:[#allocation2 + $0x1b4] sm:$0xf0]  ;;  %v888_v58 = vor.u32 %v1093_v53, %v887_v52  ;;  %v815_v61 = vld [vmem:[#allocation2 + $0xa0] sm:$0xf]  ;;  %v1075_v63 = vld [vmem:[#allocation2 + $0xa4] sm:$0xf0]  ;;  %v752_v4 = vor.u32 %v1059_v60, %v751_v59 }
  0x14   :  { %445 = vmatpush.bf16.msra.mxu0 %v768_v44  ;;  %v952_v62 = vor.u32 %v1109_v55, %v951_v54  ;;  %v879_v0 = vld [vmem:[#allocation2 + $0x120] sm:$0xf]  ;;  %v1091_v1 = vld [vmem:[#allocation2 + $0x124] sm:$0xf0]  ;;  %v816_v5 = vor.u32 %v1075_v63, %v815_v61  ;;  %v743_v7 = vld [vmem:[#allocation2 + $0x10] sm:$0xf] }
  0x15   :  { %458 = vmatpush.bf16.msra.mxu1 %v832_v45  ;;  %v943_v2 = vld [vmem:[#allocation2 + $0x1a0] sm:$0xf]  ;;  %v1107_v3 = vld [vmem:[#allocation2 + $0x1a4] sm:$0xf0]  ;;  %v880_v6 = vor.u32 %v1091_v1, %v879_v0  ;;  %v1057_v8 = vld [vmem:[#allocation2 + $0x14] sm:$0xf0] }
  0x16   :  { %471 = vmatpush.bf16.msra.mxu2 %v896_v46  ;;  %v807_v9 = vld [vmem:[#allocation2 + $0x90] sm:$0xf]  ;;  %v944_v10 = vor.u32 %v1107_v3, %v943_v2  ;;  %v1073_v11 = vld [vmem:[#allocation2 + $0x94] sm:$0xf0]  ;;  %v744_v16 = vor.u32 %v1057_v8, %v743_v7  ;;  %v735_v17 = vld [vmem:[#allocation2] sm:$0xf] }
  0x17   :  { %484 = vmatpush.bf16.msra.mxu3 %v960_v50  ;;  %v871_v12 = vld [vmem:[#allocation2 + $0x110] sm:$0xf]  ;;  %v1089_v13 = vld [vmem:[#allocation2 + $0x114] sm:$0xf0]  ;;  %v1055_v18 = vld [vmem:[#allocation2 + $0x4] sm:$0xf0]  ;;  %v808_v20 = vor.u32 %v1073_v11, %v807_v9 }
  0x18   :  { %446 = vmatpush.bf16.msra.mxu0 %v760_v56  ;;  %v935_v14 = vld [vmem:[#allocation2 + $0x190] sm:$0xf]  ;;  %v1105_v15 = vld [vmem:[#allocation2 + $0x194] sm:$0xf0]  ;;  %v799_v19 = vld [vmem:[#allocation2 + $0x80] sm:$0xf]  ;;  %v872_v21 = vor.u32 %v1089_v13, %v871_v12  ;;  %v736_v32 = vor.u32 %v1055_v18, %v735_v17 }
  0x19   :  { %459 = vmatpush.bf16.msra.mxu1 %v824_v57  ;;  %v1071_v22 = vld [vmem:[#allocation2 + $0x84] sm:$0xf0]  ;;  %v863_v23 = vld [vmem:[#allocation2 + $0x100] sm:$0xf]  ;;  %v936_v25 = vor.u32 %v1105_v15, %v935_v14  ;;  %v1068_v28 = vld [vmem:[#allocation2 + $0x74] sm:$0xf] }
  0x1a   :  { %472 = vmatpush.bf16.msra.mxu2 %v888_v58  ;;  %v1087_v24 = vld [vmem:[#allocation2 + $0x104] sm:$0xf0]  ;;  %v927_v26 = vld [vmem:[#allocation2 + $0x180] sm:$0xf]  ;;  %v793_v29 = vld [vmem:[#allocation2 + $0x78] sm:$0xf0]  ;;  %v800_v37 = vor.u32 %v1071_v22, %v799_v19 }
  0x1b   :  { %485 = vmatpush.bf16.msra.mxu3 %v952_v62  ;;  %v1103_v27 = vld [vmem:[#allocation2 + $0x184] sm:$0xf0]  ;;  %v1084_v30 = vld [vmem:[#allocation2 + $0xf4] sm:$0xf]  ;;  %v857_v33 = vld [vmem:[#allocation2 + $0xf8] sm:$0xf0]  ;;  %v864_v38 = vor.u32 %v1087_v24, %v863_v23  ;;  %v796_v43 = vor.u32 %v1068_v28, %v793_v29 }
  0x1c   :  { %447 = vmatpush.bf16.msra.mxu0 %v752_v4  ;;  %v37_v31 = vld [vmem:[%s1290_s0 + $0x8] sm:$0xff]  ;;  %v1100_v34 = vld [vmem:[#allocation2 + $0x174] sm:$0xf]  ;;  %v921_v35 = vld [vmem:[#allocation2 + $0x178] sm:$0xf0]  ;;  %v928_v42 = vor.u32 %v1103_v27, %v927_v26  ;;  %v860_v45 = vor.u32 %v1084_v30, %v857_v33  ;;  %s1173_s9 = smov 127  }
  0x1d   :  { %460 = vmatpush.bf16.msra.mxu1 %v816_v5  ;;  %v112_v36 = vunpack.c.l.b16 %v37_v31  ;;  %v1116_v39 = vld [vmem:[#allocation2 + $0x1f4] sm:$0xf]  ;;  %v985_v40 = vld [vmem:[#allocation2 + $0x1f8] sm:$0xf0]  ;;  %v113_v41 = vunpack.c.h.b16 %v37_v31  ;;  %v36_v44 = vld [vmem:[%s1290_s0] sm:$0xff]  ;;  %v924_v46 = vor.u32 %v1100_v34, %v921_v35  ;;  %vm720_vm0 = vcmask 7168  }
  0x1e   :  { %473 = vmatpush.bf16.msra.mxu2 %v880_v6  ;;  %v1066_v47 = vld [vmem:[#allocation2 + $0x64] sm:$0xf]  ;;  %v785_v48 = vld [vmem:[#allocation2 + $0x68] sm:$0xf0]  ;;  %v110_v50 = vunpack.c.l.b16 %v36_v44  ;;  %v111_v51 = vunpack.c.h.b16 %v36_v44  ;;  %v988_v52 = vor.u32 %v1116_v39, %v985_v40  ;;  %v1064_v1 = vld [vmem:[#allocation2 + $0x54] sm:$0xf] }
  0x1f   :  { %486 = vmatpush.bf16.msra.mxu3 %v944_v10  ;;  %v1082_v49 = vld [vmem:[#allocation2 + $0xe4] sm:$0xf]  ;;  %v849_v53 = vld [vmem:[#allocation2 + $0xe8] sm:$0xf0]  ;;  %v1214_v56 = vpack.c.b16 %v112_v36, %v112_v36  ;;  %v1218_v60 = vpack.c.b16 %v113_v41, %v113_v41  ;;  %v788_v61 = vor.u32 %v1066_v47, %v785_v48  ;;  %v777_v2 = vld [vmem:[#allocation2 + $0x58] sm:$0xf0] }
  0x20   :  { %448 = vmatpush.bf16.msra.mxu0 %v744_v16  ;;  %v1098_v54 = vld [vmem:[#allocation2 + $0x164] sm:$0xf]  ;;  %v913_v55 = vld [vmem:[#allocation2 + $0x168] sm:$0xf0]  ;;  %v1216_v59 = vpack.c.b16 %v110_v50, %v110_v50  ;;  %v1220_v62 = vpack.c.b16 %v111_v51, %v111_v51  ;;  %v852_v63 = vor.u32 %v1082_v49, %v849_v53  ;;  %v1080_v3 = vld [vmem:[#allocation2 + $0xd4] sm:$0xf]  ;;  %v780_v10 = vor.u32 %v1064_v1, %v777_v2 }
  0x21   :  { %461 = vmatpush.bf16.msra.mxu1 %v808_v20  ;;  %v1114_v57 = vld [vmem:[#allocation2 + $0x1e4] sm:$0xf]  ;;  %v977_v58 = vld [vmem:[#allocation2 + $0x1e8] sm:$0xf0]  ;;  %v916_v0 = vor.u32 %v1098_v54, %v913_v55  ;;  %v841_v5 = vld [vmem:[#allocation2 + $0xd8] sm:$0xf0] }
  0x22   :  { %474 = vmatpush.bf16.msra.mxu2 %v872_v21  ;;  %v980_v4 = vor.u32 %v1114_v57, %v977_v58  ;;  %v1096_v6 = vld [vmem:[#allocation2 + $0x154] sm:$0xf]  ;;  %v905_v7 = vld [vmem:[#allocation2 + $0x158] sm:$0xf0]  ;;  %v844_v11 = vor.u32 %v1080_v3, %v841_v5  ;;  %v1062_v13 = vld [vmem:[#allocation2 + $0x44] sm:$0xf] }
  0x23   :  { %487 = vmatpush.bf16.msra.mxu3 %v936_v25  ;;  %v1112_v8 = vld [vmem:[#allocation2 + $0x1d4] sm:$0xf]  ;;  %v969_v9 = vld [vmem:[#allocation2 + $0x1d8] sm:$0xf0]  ;;  %v908_v12 = vor.u32 %v1096_v6, %v905_v7  ;;  %v769_v14 = vld [vmem:[#allocation2 + $0x48] sm:$0xf0] }
  0x24   :  { %449 = vmatpush.bf16.msra.mxu0 %v736_v32  ;;  %v1078_v15 = vld [vmem:[#allocation2 + $0xc4] sm:$0xf]  ;;  %v972_v16 = vor.u32 %v1112_v8, %v969_v9  ;;  %v833_v17 = vld [vmem:[#allocation2 + $0xc8] sm:$0xf0]  ;;  %v772_v22 = vor.u32 %v1062_v13, %v769_v14  ;;  %v1060_v25 = vld [vmem:[#allocation2 + $0x34] sm:$0xf] }
  0x25   :  { %462 = vmatpush.bf16.msra.mxu1 %v800_v37  ;;  %v1094_v18 = vld [vmem:[#allocation2 + $0x144] sm:$0xf]  ;;  %v897_v19 = vld [vmem:[#allocation2 + $0x148] sm:$0xf0]  ;;  %v836_v23 = vor.u32 %v1078_v15, %v833_v17  ;;  %v761_v26 = vld [vmem:[#allocation2 + $0x38] sm:$0xf0] }
  0x26   :  { %475 = vmatpush.bf16.msra.mxu2 %v864_v38  ;;  %v1110_v20 = vld [vmem:[#allocation2 + $0x1c4] sm:$0xf]  ;;  %v961_v21 = vld [vmem:[#allocation2 + $0x1c8] sm:$0xf0]  ;;  %v900_v24 = vor.u32 %v1094_v18, %v897_v19  ;;  %v1076_v27 = vld [vmem:[#allocation2 + $0xb4] sm:$0xf]  ;;  %v764_v34 = vor.u32 %v1060_v25, %v761_v26 }
  0x27   :  { %488 = vmatpush.bf16.msra.mxu3 %v928_v42  ;;  %450 = vmatmul.bf16.vlgmr.msra.gmra.mxu0 %v1216_v59  ;;  %v964_v28 = vor.u32 %v1110_v20, %v961_v21  ;;  %v825_v29 = vld [vmem:[#allocation2 + $0xb8] sm:$0xf0]  ;;  %v1092_v30 = vld [vmem:[#allocation2 + $0x134] sm:$0xf]  ;;  %v1058_v37 = vld [vmem:[#allocation2 + $0x24] sm:$0xf] }
  0x28   :  { %494 = vmatpush.bf16.msrb.mxu0 %v796_v43  ;;  %463 = vmatmul.bf16.vlgmr.msra.gmra.mxu1 %v1220_v62  ;;  %v889_v31 = vld [vmem:[#allocation2 + $0x138] sm:$0xf0]  ;;  %v1108_v32 = vld [vmem:[#allocation2 + $0x1b4] sm:$0xf]  ;;  %v828_v35 = vor.u32 %v1076_v27, %v825_v29  ;;  %v753_v38 = vld [vmem:[#allocation2 + $0x28] sm:$0xf0] }
  0x29   :  { %507 = vmatpush.bf16.msrb.mxu1 %v860_v45  ;;  %476 = vmatmul.bf16.vlgmr.msra.gmra.mxu2 %v1214_v56  ;;  %v953_v33 = vld [vmem:[#allocation2 + $0x1b8] sm:$0xf0]  ;;  %v892_v36 = vor.u32 %v1092_v30, %v889_v31  ;;  %v1074_v39 = vld [vmem:[#allocation2 + $0xa4] sm:$0xf]  ;;  %v817_v41 = vld [vmem:[#allocation2 + $0xa8] sm:$0xf0] }
  0x2a   :  { %520 = vmatpush.bf16.msrb.mxu2 %v924_v46  ;;  %489 = vmatmul.bf16.vlgmr.msra.gmra.mxu3 %v1218_v60  ;;  %v956_v40 = vor.u32 %v1108_v32, %v953_v33  ;;  %v1090_v42 = vld [vmem:[#allocation2 + $0x124] sm:$0xf]  ;;  %v881_v43 = vld [vmem:[#allocation2 + $0x128] sm:$0xf0]  ;;  %v756_v46 = vor.u32 %v1058_v37, %v753_v38  ;;  %v820_v47 = vor.u32 %v1074_v39, %v817_v41  ;;  %v1056_v49 = vld [vmem:[#allocation2 + $0x14] sm:$0xf] }
  0x2b   :  { %533 = vmatpush.bf16.msrb.mxu3 %v988_v52  ;;  %v1106_v44 = vld [vmem:[#allocation2 + $0x1a4] sm:$0xf]  ;;  %v945_v45 = vld [vmem:[#allocation2 + $0x1a8] sm:$0xf0]  ;;  %v884_v48 = vor.u32 %v1090_v42, %v881_v43  ;;  %v745_v50 = vld [vmem:[#allocation2 + $0x18] sm:$0xf0] }
  0x2c   :  { %495 = vmatpush.bf16.msrb.mxu0 %v788_v61  ;;  %v1072_v51 = vld [vmem:[#allocation2 + $0x94] sm:$0xf]  ;;  %v948_v52 = vor.u32 %v1106_v44, %v945_v45  ;;  %v809_v53 = vld [vmem:[#allocation2 + $0x98] sm:$0xf0]  ;;  %v748_v61 = vor.u32 %v1056_v49, %v745_v50  ;;  %v1054_v1 = vld [vmem:[#allocation2 + $0x4] sm:$0xf] }
  0x2d   :  { %508 = vmatpush.bf16.msrb.mxu1 %v852_v63  ;;  %v1088_v54 = vld [vmem:[#allocation2 + $0x114] sm:$0xf]  ;;  %v873_v55 = vld [vmem:[#allocation2 + $0x118] sm:$0xf0]  ;;  %v812_v63 = vor.u32 %v1072_v51, %v809_v53  ;;  %v737_v2 = vld [vmem:[#allocation2 + $0x8] sm:$0xf0] }
  0x2e   :  { %521 = vmatpush.bf16.msrb.mxu2 %v916_v0  ;;  %v1104_v57 = vld [vmem:[#allocation2 + $0x194] sm:$0xf]  ;;  %v937_v58 = vld [vmem:[#allocation2 + $0x198] sm:$0xf0]  ;;  %v876_v0 = vor.u32 %v1088_v54, %v873_v55  ;;  %v1070_v3 = vld [vmem:[#allocation2 + $0x84] sm:$0xf] }
  0x2f   :  { %534 = vmatpush.bf16.msrb.mxu3 %v980_v4  ;;  %v940_v4 = vor.u32 %v1104_v57, %v937_v58  ;;  %v801_v5 = vld [vmem:[#allocation2 + $0x88] sm:$0xf0]  ;;  %v1086_v6 = vld [vmem:[#allocation2 + $0x104] sm:$0xf]  ;;  %v1125_v14 = vld [vmem:[%s1293_s3 + $0x38] sm:$0xff]  ;;  %s1174_s10 = smov 1  }
  0x30   :  { %496 = vmatpush.bf16.msrb.mxu0 %v780_v10  ;;  %v865_v7 = vld [vmem:[#allocation2 + $0x108] sm:$0xf0]  ;;  %v1102_v8 = vld [vmem:[#allocation2 + $0x184] sm:$0xf]  ;;  %v740_v10 = vor.u32 %v1054_v1, %v737_v2  ;;  %v1124_v15 = vld [vmem:[%s1293_s3 + $0x30] sm:$0xff]  ;;  %vm726_vm1 = vcmask 15368  }
  0x31   :  { %509 = vmatpush.bf16.msrb.mxu1 %v844_v11  ;;  %v929_v9 = vld [vmem:[#allocation2 + $0x188] sm:$0xf0]  ;;  %v804_v11 = vor.u32 %v1070_v3, %v801_v5  ;;  %v1122_v17 = vld [vmem:[%s1293_s3 + $0x20] sm:$0xff]  ;;  %v1132_v19 = vld [vmem:[%s1293_s3 + $0x70] sm:$0xff] }
  0x32   :  { %522 = vmatpush.bf16.msrb.mxu2 %v908_v12  ;;  %v868_v12 = vor.u32 %v1086_v6, %v865_v7  ;;  %v932_v13 = vor.u32 %v1102_v8, %v929_v9  ;;  %v1118_v18 = vld [vmem:[%s1293_s3] sm:$0xff]  ;;  %v1131_v20 = vld [vmem:[%s1293_s3 + $0x68] sm:$0xff]  ;;  %v1128_v25 = vld [vmem:[%s1293_s3 + $0x50] sm:$0xff] }
  0x33   :  { %535 = vmatpush.bf16.msrb.mxu3 %v972_v16  ;;  %v1123_v16 = vld [vmem:[%s1293_s3 + $0x28] sm:$0xff]  ;;  %v1130_v21 = vld [vmem:[%s1293_s3 + $0x60] sm:$0xff] }
  0x34   :  { %497 = vmatpush.bf16.msrb.mxu0 %v772_v22  ;;  %v102_v22 = vld [vmem:[%s1292_s2] sm:$0x3]  ;;  %v1127_v30 = vld [vmem:[%s1293_s3 + $0x48] sm:$0xff] }
  0x35   :  { %510 = vmatpush.bf16.msrb.mxu1 %v836_v23  ;;  %v1129_v23 = vld [vmem:[%s1293_s3 + $0x58] sm:$0xff]  ;;  %v105_v42 = vperm.slane %v102_v22, 1 }
  0x36   :  { %523 = vmatpush.bf16.msrb.mxu2 %v900_v24  ;;  %v104_v24 = vperm.slane %v102_v22, 0 }
  0x37   :  { %536 = vmatpush.bf16.msrb.mxu3 %v964_v28 }
  0x38   :  { %498 = vmatpush.bf16.msrb.mxu0 %v764_v34 }
  0x39   :  { %511 = vmatpush.bf16.msrb.mxu1 %v828_v35 }
  0x3a   :  { %524 = vmatpush.bf16.msrb.mxu2 %v892_v36  ;;  %v1126_v36 = vld [vmem:[%s1293_s3 + $0x40] sm:$0xff] }
  0x3b   :  { %537 = vmatpush.bf16.msrb.mxu3 %v956_v40 }
  0x3c   :  { %499 = vmatpush.bf16.msrb.mxu0 %v756_v46 }
  0x3d   :  { %512 = vmatpush.bf16.msrb.mxu1 %v820_v47 }
  0x3e   :  { %525 = vmatpush.bf16.msrb.mxu2 %v884_v48 }
  0x3f   :  { %538 = vmatpush.bf16.msrb.mxu3 %v948_v52 }
  0x40   :  { %500 = vmatpush.bf16.msrb.mxu0 %v748_v61 }
  0x41   :  { %513 = vmatpush.bf16.msrb.mxu1 %v812_v63  ;;  %v1139_v63 = vld [vmem:[%s1294_s4] ss:$0 sm:$0xff] }
  0x42   :  { %526 = vmatpush.bf16.msrb.mxu2 %v876_v0 }
  0x43   :  { %539 = vmatpush.bf16.msrb.mxu3 %v940_v4 }
  0x44   :  { %501 = vmatpush.bf16.msrb.mxu0 %v740_v10 }
  0x45   :  { %514 = vmatpush.bf16.msrb.mxu1 %v804_v11 }
  0x46   :  { %527 = vmatpush.bf16.msrb.mxu2 %v868_v12 }
  0x47   :  { %540 = vmatpush.bf16.msrb.mxu3 %v932_v13  ;;  %502 = vmatmul.bf16.vlgmr.msrb.gmra.mxu0 %v1216_v59  ;;  %v1121_v59 = vld [vmem:[%s1293_s3 + $0x18] sm:$0xff] }
  0x48   :  { %682 = vmatpush.bf16.msra.mxu0 %v1125_v14  ;;  %515 = vmatmul.bf16.vlgmr.msrb.gmra.mxu1 %v1220_v62  ;;  %v1133_v62 = vld [vmem:[%s1293_s3 + $0x78] sm:$0xff] }
  0x49   :  { %528 = vmatmul.bf16.vlgmr.msrb.gmra.mxu2 %v1214_v56  ;;  %v1120_v56 = vld [vmem:[%s1293_s3 + $0x10] sm:$0xff]  ;;  %695 = vmatpush.bf16.msra.mxu1 %v1133_v62 }
  0x4a   :  { %541 = vmatmul.bf16.vlgmr.msrb.gmra.mxu3 %v1218_v60  ;;  %v1119_v60 = vld [vmem:[%s1293_s3 + $0x8] sm:$0xff] }
  0x4c   :  { %683 = vmatpush.bf16.msra.mxu0 %v1124_v15 }
  0x4d   :  { %696 = vmatpush.bf16.msra.mxu1 %v1132_v19 }
  0x50   :  { %684 = vmatpush.bf16.msra.mxu0 %v1123_v16 }
  0x51   :  { %697 = vmatpush.bf16.msra.mxu1 %v1131_v20 }
  0x54   :  { %685 = vmatpush.bf16.msra.mxu0 %v1122_v17 }
  0x55   :  { %698 = vmatpush.bf16.msra.mxu1 %v1130_v21 }
  0x58   :  { %686 = vmatpush.bf16.msra.mxu0 %v1121_v59 }
  0x59   :  { %699 = vmatpush.bf16.msra.mxu1 %v1129_v23 }
  0x5c   :  { %687 = vmatpush.bf16.msra.mxu0 %v1120_v56 }
  0x5d   :  { %700 = vmatpush.bf16.msra.mxu1 %v1128_v25 }
  0x60   :  { %688 = vmatpush.bf16.msra.mxu0 %v1119_v60 }
  0x61   :  { %701 = vmatpush.bf16.msra.mxu1 %v1127_v30 }
  0x64   :  { %689 = vmatpush.bf16.msra.mxu0 %v1118_v18 }
  0x65   :  { %702 = vmatpush.bf16.msra.mxu1 %v1126_v36 }
  0xa4   :  { %v451_v26 = vpop.f32.mrf.mxu0 }
  0xa5   :  { %v452_v27 = vadd.f32 %v451_v26, %v104_v24  ;;  %v464_v28 = vpop.f32.mrf.mxu1 }
  0xa7   :  { %v465_v29 = vadd.f32 %v464_v28, %v452_v27 }
  0xac   :  { %v477_v31 = vpop.f32.mrf.mxu2  ;;  %v453_v35 = vpop.f32.mrf.mxu0 }
  0xad   :  { %v478_v32 = vadd.f32 %v477_v31, %v465_v29  ;;  %v490_v33 = vpop.f32.mrf.mxu3  ;;  %v466_v37 = vpop.f32.mrf.mxu1 }
  0xaf   :  { %v491_v34 = vadd.f32 %v490_v33, %v478_v32 }
  0xb1   :  { %v546_v38 = vmax.f32 %v491_v34, 0.0 }
  0xb3   :  { %v548_v39 = vpack.c.bf16 %v546_v38, %v546_v38 }
  0xb4   :  { %v479_v40 = vpop.f32.mrf.mxu2 }
  0xb5   :  { %690 = vmatmul.bf16.vlgmr.msra.gmra.mxu0 %v548_v39  ;;  %v492_v41 = vpop.f32.mrf.mxu3 }
  0xc4   :  { %v503_v43 = vpop.f32.mrf.mxu0 }
  0xc5   :  { %v504_v44 = vadd.f32 %v503_v43, %v105_v42  ;;  %v516_v45 = vpop.f32.mrf.mxu1 }
  0xc7   :  { %v517_v46 = vadd.f32 %v516_v45, %v504_v44 }
  0xcc   :  { %v529_v47 = vpop.f32.mrf.mxu2  ;;  %v505_v50 = vpop.f32.mrf.mxu0 }
  0xcd   :  { %v530_v48 = vadd.f32 %v529_v47, %v517_v46  ;;  %v542_v49 = vpop.f32.mrf.mxu3  ;;  %v518_v51 = vpop.f32.mrf.mxu1 }
  0xcf   :  { %v543_v52 = vadd.f32 %v542_v49, %v530_v48 }
  0xd1   :  { %v547_v53 = vmax.f32 %v543_v52, 0.0 }
  0xd3   :  { %v549_v54 = vpack.c.bf16 %v547_v53, %v547_v53 }
  0xd4   :  { %v531_v55 = vpop.f32.mrf.mxu2 }
  0xd5   :  { %v544_v57 = vpop.f32.mrf.mxu3  ;;  %703 = vmatmul.bf16.vlgmr.msra.gmra.mxu1 %v549_v54 }
 0x132   :  { %v691_v58 = vpop.f32.mrf.mxu0 }
 0x133   :  { %v692_v0 = vadd.f32 %v1139_v63, %v691_v58 }
 0x13a   :  { %v693_v61 = vpop.f32.mrf.mxu0 }
 0x152   :  { %v704_v1 = vpop.f32.mrf.mxu1 }
 0x153   :  { %v705_v2 = vadd.f32 %v704_v1, %v692_v0 }
 0x155   :  { %709 = vrot.lane.b32.xlu0 %v705_v2, %s1173_s9 }
 0x15a   :  { %v706_v3 = vpop.f32.mrf.mxu1 }
 0x1c7   :  { %v710_v4 = vpop.permute.xlu0 %709 }
 0x1c8   :  { %v712_v5 = vsub.f32 %v705_v2, %v710_v4 }
 0x1ca   :  { %v1053_v6 = vclamps-f32 %v712_v5, 30.0 }
 0x1cc   :  { %v715_v7 = vmul.f32 1.442695, %v1053_v6 }
 0x1ce   :  { %1140 = vpow2.f32 %v715_v7 }
 0x1d4   :  { %v1141_v8 = vpop.eup %1140 }
 0x1d5   :  { %v717_v9 = vadd.f32 1.0, %v1141_v8 }
 0x1d7   :  { %1142 = vrcp.f32 %v717_v9 }
 0x1dd   :  { %v1143_v10 = vpop.eup %1142 }
 0x1de   :  { %v719_v11 = vsub.f32 1.0, %v1143_v10  ;;  %723 = vrot.lane.b32.xlu0 %v1143_v10, %s1174_s10 }
 0x1e0   :  { %721 = vst.msk [vmem:[%s1295_s5] sm:$0xff] %vm720_vm0, %v719_v11 }
 0x250   :  { %v724_v12 = vpop.permute.xlu0 %723 }
 0x251   :  { %727 = vst.msk [vmem:[%s1295_s5] sm:$0xff] %vm726_vm1, %v724_v12 }
 0x252   :  { %732 = vsyncpa [#allocation3], 1 }

</bundles_post_ra>
